<compile_context>
chip_gen: v7x
topology: tpu7x:2x2x1
jax: 0.10.0
libtpu: 0.0.40
codegen_flags: <defaults>
</compile_context>

<pallas_src>
import functools
import math

import jax
import jax.numpy as jnp
from jax import lax
from jax.experimental import pallas as pl
from jax.experimental.pallas import tpu as pltpu

KH = KW = 9
PAD = 4
LANE = 128        # pad Cout up to a full lane width
MAX_BT = 256      # cap on batch rows per grid step (fills MXU M on v6e/v7x)
_INV_SQRT2 = 1.0 / math.sqrt(2.0)


def _round_up(n, m):
    return ((n + m - 1) // m) * m


def _choose_bt(batch):
    # bf16 inputs need a (16,128)-aligned sublane tile; cap at 256 for MXU M fill.
    return min(MAX_BT, _round_up(max(batch, 1), 16))


def _pooled_conv_bias_gelu_kernel(x_ref, w_ref, b_ref, o_ref):
    # x_ref : (BT, K)        bf16 flattened (Cin*H*W) rows for BT batch elements
    # w_ref : (K, COUT_PAD)  bf16 folded conv + avg-pool weights (1/(H*W) included)
    # b_ref : (1, COUT_PAD)  f32 bias (zero-padded past Cout)
    # o_ref : (BT, COUT_PAD) f32 gelu(avgpool(conv(x)) + bias)
    pooled = jnp.dot(x_ref[...], w_ref[...], preferred_element_type=jnp.float32)
    pooled = pooled + b_ref[...]
    # exact (erf-based) GELU, matching torch.nn.GELU() default
    gelu = 0.5 * pooled * (1.0 + lax.erf(pooled * _INV_SQRT2))
    o_ref[...] = gelu.astype(o_ref.dtype)


def fold_conv_avgpool_weights(w_hwio, H, W):
    """One-time (parameter-load) transform: conv + global-avg-pool -> (K, 128) bf16.

    Called ONCE outside the forward path; the result is reused for every call.
    """
    Cin, Cout = w_hwio.shape[2], w_hwio.shape[3]
    K = Cin * H * W
    cout_pad = _round_up(Cout, LANE)
    # A[a, h] = 1 iff conv tap `a` applied at input row h lands inside the output map
    hh = jnp.arange(H)[None, :]
    aa = jnp.arange(KH)[:, None]
    A = ((aa <= hh + PAD) & (hh + PAD <= aa + H - 1)).astype(jnp.float32)   # (KH, H)
    ww = jnp.arange(W)[None, :]
    bb = jnp.arange(KW)[:, None]
    Bm = ((bb <= ww + PAD) & (ww + PAD <= bb + W - 1)).astype(jnp.float32)  # (KW, W)
    w_eff = jnp.einsum("ah,bw,abio->ihwo", A, Bm, w_hwio,
                       precision=lax.Precision.HIGHEST)                     # (Cin,H,W,Cout)
    w_eff = w_eff.reshape(K, Cout) * (1.0 / (H * W))      # fold the avg-pool scale
    w_eff = jnp.pad(w_eff, ((0, 0), (0, cout_pad - Cout)))                  # lane-dense out
    return w_eff.astype(jnp.bfloat16)


@jax.jit
def model_forward(x_nchw, w_eff, bias):
    B, Cin, H, W = x_nchw.shape
    K, cout_pad = w_eff.shape
    Cout = bias.shape[0]
    BT = _choose_bt(B)
    B_pad = _round_up(B, BT)

    # data layout glue: flatten NCHW rows, cast to bf16, pad batch only if needed
    x_flat = x_nchw.reshape(B, K).astype(jnp.bfloat16)
    if B_pad != B:
        x_flat = jnp.pad(x_flat, ((0, B_pad - B), (0, 0)))
    b_pad = jnp.pad(bias.reshape(1, Cout).astype(jnp.float32),
                    ((0, 0), (0, cout_pad - Cout)))

    out = pl.pallas_call(
        _pooled_conv_bias_gelu_kernel,
        out_shape=jax.ShapeDtypeStruct((B_pad, cout_pad), jnp.float32),
        grid_spec=pltpu.PrefetchScalarGridSpec(
            num_scalar_prefetch=0,
            grid=(B_pad // BT,),
            in_specs=[
                pl.BlockSpec((BT, K), lambda bi: (bi, 0)),
                pl.BlockSpec((K, cout_pad), lambda bi: (0, 0)),   # resident weights
                pl.BlockSpec((1, cout_pad), lambda bi: (0, 0)),
            ],
            out_specs=pl.BlockSpec((BT, cout_pad), lambda bi: (bi, 0)),
        ),
        compiler_params=pltpu.CompilerParams(dimension_semantics=("parallel",)),
    )(x_flat, w_eff, b_pad)

    out = out[:B, :Cout]
    # maxpool(4,4) on a 1x1 map and the 6-D view are dropped (see TODOs above);
    # keep the trailing squeeze semantics.
    return jnp.squeeze(out)


if __name__ == "__main__":
    key = jax.random.PRNGKey(0)
    kx, kw, kb = jax.random.split(key, 3)

    # small shapes consistent with the module (Cin=12, Cout=24 are fixed by conv)
    B, Cin, H, W = 2, 12, 16, 16
    Cout = 24

    x = jax.random.normal(kx, (B, Cin, H, W), dtype=jnp.float32)

    # deterministic Conv2d-style init: U(-1/sqrt(fan_in), 1/sqrt(fan_in))
    fan_in = Cin * KH * KW
    bound = 1.0 / math.sqrt(fan_in)
    w = jax.random.uniform(kw, (KH, KW, Cin, Cout), jnp.float32, -bound, bound)
    b = jax.random.uniform(kb, (Cout,), jnp.float32, -bound, bound)

    # one-time weight folding at "parameter-load" time — NOT in the forward path
    w_eff = jax.block_until_ready(fold_conv_avgpool_weights(w, H, W))

    out = jax.block_until_ready(model_forward(x, w_eff, b))

    # pure-JAX reference: conv -> global avg pool -> exact gelu -> squeeze
    w_oihw = jnp.transpose(w, (3, 2, 0, 1))
    conv = lax.conv_general_dilated(
        x, w_oihw, window_strides=(1, 1),
        padding=((PAD, PAD), (PAD, PAD)),
        dimension_numbers=("NCHW", "OIHW", "NCHW"),
        precision=lax.Precision.HIGHEST,
    ) + b.reshape(1, Cout, 1, 1)
    ref = jnp.mean(conv, axis=(2, 3))               # adaptive avg pool (1,1)
    ref = jax.nn.gelu(ref, approximate=False)        # exact GELU
    ref = jnp.squeeze(ref)

    assert out.shape == ref.shape, (out.shape, ref.shape)
    # bf16 inputs with f32 MXU accumulation: loosen tolerance accordingly
    assert jnp.allclose(out, ref, atol=1e-2, rtol=1e-2), (out, ref)
    print("KERNEL_OK")
</pallas_src>

<mosaic_0001>
module attributes {stable_mosaic.version = 11 : i64} {
  func.func @_pooled_conv_bias_gelu_kernel(%arg0: i32, %arg1: memref<16x3072xbf16, #tpu.memory_space<vmem>>, %arg2: memref<3072x128xbf16, #tpu.memory_space<vmem>>, %arg3: memref<1x128xf32, #tpu.memory_space<vmem>>, %arg4: memref<16x128xf32, #tpu.memory_space<vmem>>) attributes {dimension_semantics = [#tpu.dimension_semantics<parallel>], iteration_bounds = array<i64: 1>, scalar_prefetch = 0 : i64, scratch_operands = 0 : i64, tpu.core_type = #tpu.core_type<tc>, window_params = [{transform_indices = @transform_0, window_bounds = array<i64: 16, 3072>}, {pipeline_mode = #tpu.pipeline_mode<synchronous>, transform_indices = @transform_1, window_bounds = array<i64: 3072, 128>}, {pipeline_mode = #tpu.pipeline_mode<synchronous>, transform_indices = @transform_2, window_bounds = array<i64: 1, 128>}, {transform_indices = @transform_3, window_bounds = array<i64: 16, 128>}]} {
    %c0 = arith.constant 0 : index
    %c0_0 = arith.constant 0 : index
    %0 = vector.load %arg1[%c0, %c0_0] : memref<16x3072xbf16, #tpu.memory_space<vmem>>, vector<16x3072xbf16>
    %c0_1 = arith.constant 0 : index
    %c0_2 = arith.constant 0 : index
    %1 = vector.load %arg2[%c0_1, %c0_2] : memref<3072x128xbf16, #tpu.memory_space<vmem>>, vector<3072x128xbf16>
    %cst = arith.constant dense<0.000000e+00> : vector<16x128xf32>
    %2 = tpu.matmul %0, %1, %cst {dimension_numbers = #tpu.dot_dimension_numbers<[1], [0], [0], [1], [0, 0, 1, 1], [], []>} : vector<16x3072xbf16>, vector<3072x128xbf16>, vector<16x128xf32> -> vector<16x128xf32>
    %c0_3 = arith.constant 0 : index
    %c0_4 = arith.constant 0 : index
    %3 = vector.load %arg3[%c0_3, %c0_4] : memref<1x128xf32, #tpu.memory_space<vmem>>, vector<1x128xf32>
    %4 = vector.broadcast %3 : vector<1x128xf32> to vector<16x128xf32>
    %5 = arith.addf %2, %4 : vector<16x128xf32>
    %cst_5 = arith.constant 5.000000e-01 : f32
    %6 = vector.broadcast %cst_5 : f32 to vector<16x128xf32>
    %7 = arith.mulf %6, %5 : vector<16x128xf32>
    %cst_6 = arith.constant 0.707106769 : f32
    %8 = vector.broadcast %cst_6 : f32 to vector<16x128xf32>
    %9 = arith.mulf %5, %8 : vector<16x128xf32>
    %10 = math.erf %9 : vector<16x128xf32>
    %cst_7 = arith.constant 1.000000e+00 : f32
    %11 = vector.broadcast %cst_7 : f32 to vector<16x128xf32>
    %12 = arith.addf %11, %10 : vector<16x128xf32>
    %13 = arith.mulf %7, %12 : vector<16x128xf32>
    %c0_8 = arith.constant 0 : index
    %c0_9 = arith.constant 0 : index
    %14 = vector.load %arg4[%c0_8, %c0_9] : memref<16x128xf32, #tpu.memory_space<vmem>>, vector<16x128xf32>
    tpu.vector_store %arg4[%c0_8, %c0_9], %13 {strides = array<i32>} : memref<16x128xf32, #tpu.memory_space<vmem>>, vector<16x128xf32>,
    return
  }
  func.func @transform_0(%arg0: i32) -> (i32, i32) {
    %c0_i32 = arith.constant 0 : i32
    %c0_i32_0 = arith.constant 0 : i32
    return %arg0, %c0_i32 : i32, i32
  }
  func.func @transform_1(%arg0: i32) -> (i32, i32) {
    %c0_i32 = arith.constant 0 : i32
    %c0_i32_0 = arith.constant 0 : i32
    %c0_i32_1 = arith.constant 0 : i32
    return %c0_i32, %c0_i32_0 : i32, i32
  }
  func.func @transform_2(%arg0: i32) -> (i32, i32) {
    %c0_i32 = arith.constant 0 : i32
    %c0_i32_0 = arith.constant 0 : i32
    %c0_i32_1 = arith.constant 0 : i32
    return %c0_i32, %c0_i32_0 : i32, i32
  }
  func.func @transform_3(%arg0: i32) -> (i32, i32) {
    %c0_i32 = arith.constant 0 : i32
    %c0_i32_0 = arith.constant 0 : i32
    return %arg0, %c0_i32 : i32, i32
  }
}

</mosaic_0001>

<bundles_post_ra>
// kernel: model_forward.1
= control target key start
LH: loop header
LB: loop body
LE: loop exit
PB: predicated region body
PF: predicated region fallthrough
CT: control target
= control target key end

     0   :  { %8 = vsyncpa [#allocation3], 0  ;;  %s2929_s12 = smov [#allocation2]   ;;  %s3045_s0 = inlined_call_operand.vmem [shape: bf16[16,3072], index: 0, kind: input, shape index: {}]   ;;  %s3046_s1 = inlined_call_operand.hbm [shape: bf16[3072,128], index: 1, kind: input, shape index: {}]   ;;  %s3047_s2 = inlined_call_operand.vmem [shape: f32[1,128], index: 2, kind: input, shape index: {}]   ;;  %s3048_s3 = inlined_call_operand.vmem [shape: f32[16,128], index: 3, kind: output, shape index: {}]  }
   0x1   :  { %s16_s13 = sshll.u32 %s2929_s12, 4  ;;  %s2905_s16 = scalar_lea.hbm %s3046_s1, 24576  ;;  %s17_s13 = int_to_ptr.vmem [resolvable:$true] %s16_s13 }
   0x2   :  { %p2906_p0 = scmp.ne.s32.totalorder %s3046_s1, %s2905_s16  ;;  %p2909_p1 = scmp.lt.u32.totalorder %s2905_s16, %s3046_s1 }
   0x4   :  { %p2911_p2 = pnand %p2909_p1, %p2906_p0 }
   0x6   :  { %2914 = shalt.err (!%p2911_p2)
}
   0x7   :  { %s2915_s21 = scalar_lea.vmem %s17_s13, 24576  ;;  %p2920_p4 = scmp.lt.s32.totalorder %s17_s13, %s17_s13 }
   0x8   :  { %p2916_p3 = scmp.ne.s32.totalorder %s17_s13, %s2915_s21  ;;  %p2921_p5 = scmp.lt.s32.totalorder %s2915_s21, %s2915_s21 }
   0xa   :  { %p2922_p6 = por %p2921_p5, %p2920_p4 }
   0xc   :  { %p2923_p7 = pnand %p2922_p6, %p2916_p3 }
   0xe   :  { %2926 = shalt.err (!%p2923_p7)
}
   0xf   :  { %s2930_s22 = smov 64   ;;  %s2931_s23 = smov 4  }
  0x10   :  { %22 = dma.hbm_to_vmem [thread:$0]  %s3046_s1, 24576, %s17_s13, [#allocation3], %s2930_s22, %s2930_s22, %s2931_s23  }
  0x11   :  { %2927 = dma.done.wait [#allocation3], 24576  }
  0x12   :  { %2928 = vsyncadd [#allocation3], 4294942720  ;;  %v2709_v0 = vld [vmem:[#allocation2 + $0x40] sm:$0xff]   ;;  %v2713_v4 = vld [vmem:[#allocation2 + $0x48] sm:$0xff]  }
  0x13   :  { %v2710_v1 = vld [vmem:[#allocation2 + $0xc0] sm:$0xff]   ;;  %2442 = vmatprep.subr.bf16.mxu0 %v2709_v0  ;;  %v2714_v5 = vld [vmem:[#allocation2 + $0xc8] sm:$0xff]   ;;  %v2717_v8 = vld [vmem:[#allocation2 + $0x50] sm:$0xff]  }
  0x14   :  { %v2711_v2 = vld [vmem:[#allocation2] sm:$0xff]   ;;  %2464 = vmatprep.subr.bf16.mxu1 %v2710_v1  ;;  %v2715_v6 = vld [vmem:[#allocation2 + $0x8] sm:$0xff]   ;;  %v2718_v9 = vld [vmem:[#allocation2 + $0xd0] sm:$0xff]  }
  0x15   :  { %v2712_v3 = vld [vmem:[#allocation2 + $0x80] sm:$0xff]   ;;  %2443 = vmatpush3.bf16.msra.mxu0 %v2711_v2  ;;  %v2716_v7 = vld [vmem:[#allocation2 + $0x88] sm:$0xff]   ;;  %v2719_v10 = vld [vmem:[#allocation2 + $0x10] sm:$0xff]  }
  0x16   :  { %2465 = vmatpush3.bf16.msra.mxu1 %v2712_v3  ;;  %2444 = vmatprep.subr.bf16.mxu0 %v2713_v4  ;;  %v2720_v11 = vld [vmem:[#allocation2 + $0x90] sm:$0xff]   ;;  %v2721_v12 = vld [vmem:[#allocation2 + $0x58] sm:$0xff]   ;;  %v2725_v16 = vld [vmem:[#allocation2 + $0x60] sm:$0xff]  }
  0x17   :  { %2466 = vmatprep.subr.bf16.mxu1 %v2714_v5  ;;  %v2722_v13 = vld [vmem:[#allocation2 + $0xd8] sm:$0xff]   ;;  %v2726_v17 = vld [vmem:[#allocation2 + $0xe0] sm:$0xff]   ;;  %v2729_v20 = vld [vmem:[#allocation2 + $0x68] sm:$0xff]  }
  0x18   :  { %v2723_v14 = vld [vmem:[#allocation2 + $0x18] sm:$0xff]   ;;  %v2727_v18 = vld [vmem:[#allocation2 + $0x20] sm:$0xff]   ;;  %v2730_v21 = vld [vmem:[#allocation2 + $0xe8] sm:$0xff]  }
  0x19   :  { %2445 = vmatpush3.bf16.msra.mxu0 %v2715_v6  ;;  %v2724_v15 = vld [vmem:[#allocation2 + $0x98] sm:$0xff]   ;;  %v2728_v19 = vld [vmem:[#allocation2 + $0xa0] sm:$0xff]   ;;  %v2731_v22 = vld [vmem:[#allocation2 + $0x28] sm:$0xff]  }
  0x1a   :  { %2467 = vmatpush3.bf16.msra.mxu1 %v2716_v7  ;;  %2446 = vmatprep.subr.bf16.mxu0 %v2717_v8  ;;  %v2732_v23 = vld [vmem:[#allocation2 + $0xa8] sm:$0xff]   ;;  %v2733_v24 = vld [vmem:[#allocation2 + $0x70] sm:$0xff]   ;;  %v2737_v28 = vld [vmem:[#allocation2 + $0x78] sm:$0xff]  }
  0x1b   :  { %2468 = vmatprep.subr.bf16.mxu1 %v2718_v9  ;;  %v2734_v25 = vld [vmem:[#allocation2 + $0xf0] sm:$0xff]   ;;  %v2738_v29 = vld [vmem:[#allocation2 + $0xf8] sm:$0xff]   ;;  %v29_v32 = vld [vmem:[%s3045_s0] sm:$0xff] }
  0x1c   :  { %v2735_v26 = vld [vmem:[#allocation2 + $0x30] sm:$0xff]   ;;  %v2739_v30 = vld [vmem:[#allocation2 + $0x38] sm:$0xff]   ;;  %v41_v33 = vld [vmem:[%s3045_s0 + $0x60] sm:$0xff] }
  0x1d   :  { %2447 = vmatpush3.bf16.msra.mxu0 %v2719_v10  ;;  %v2736_v27 = vld [vmem:[#allocation2 + $0xb0] sm:$0xff]   ;;  %v2740_v31 = vld [vmem:[#allocation2 + $0xb8] sm:$0xff]   ;;  %v30_v34 = vld [vmem:[%s3045_s0 + $0x8] sm:$0xff]  ;;  %v2226_v35 = vcombine.low %v29_v32, %v41_v33  ;;  %v2227_v36 = vcombine.high %v29_v32, %v41_v33 }
  0x1e   :  { %2469 = vmatpush3.bf16.msra.mxu1 %v2720_v11  ;;  %2448 = vmatprep.subr.bf16.mxu0 %v2721_v12  ;;  %v42_v37 = vld [vmem:[%s3045_s0 + $0x68] sm:$0xff]  ;;  %v2741_v40 = vld [vmem:[#allocation2 + $0x140] sm:$0xff]   ;;  %v2749_v48 = vld [vmem:[#allocation2 + $0x150] sm:$0xff]  }
  0x1f   :  { %2470 = vmatprep.subr.bf16.mxu1 %v2722_v13  ;;  %v2228_v38 = vcombine.low %v30_v34, %v42_v37  ;;  %v2229_v39 = vcombine.high %v30_v34, %v42_v37  ;;  %1748 = vmatprep.mubr.bf16.mxu0 %v2227_v36  ;;  %v2742_v41 = vld [vmem:[#allocation2 + $0x1c0] sm:$0xff]   ;;  %v2745_v44 = vld [vmem:[#allocation2 + $0x148] sm:$0xff]   ;;  %v2750_v49 = vld [vmem:[#allocation2 + $0x1d0] sm:$0xff]  }
  0x20   :  { %v2743_v42 = vld [vmem:[#allocation2 + $0x100] sm:$0xff]   ;;  %v2746_v45 = vld [vmem:[#allocation2 + $0x1c8] sm:$0xff]   ;;  %v2751_v50 = vld [vmem:[#allocation2 + $0x110] sm:$0xff]  }
  0x21   :  { %2449 = vmatpush3.bf16.msra.mxu0 %v2723_v14  ;;  %1789 = vmatprep.mubr.bf16.mxu1 %v2229_v39  ;;  %v2744_v43 = vld [vmem:[#allocation2 + $0x180] sm:$0xff]   ;;  %v2747_v46 = vld [vmem:[#allocation2 + $0x108] sm:$0xff]   ;;  %v2752_v51 = vld [vmem:[#allocation2 + $0x190] sm:$0xff]  }
  0x22   :  { %2471 = vmatpush3.bf16.msra.mxu1 %v2724_v15  ;;  %2450 = vmatprep.subr.bf16.mxu0 %v2725_v16  ;;  %v2748_v47 = vld [vmem:[#allocation2 + $0x188] sm:$0xff]   ;;  %v2753_v52 = vld [vmem:[#allocation2 + $0x158] sm:$0xff]   ;;  %v2757_v56 = vld [vmem:[#allocation2 + $0x160] sm:$0xff]  }
  0x23   :  { %2472 = vmatprep.subr.bf16.mxu1 %v2726_v17  ;;  %v2754_v53 = vld [vmem:[#allocation2 + $0x1d8] sm:$0xff]   ;;  %v2758_v57 = vld [vmem:[#allocation2 + $0x1e0] sm:$0xff]   ;;  %v2761_v60 = vld [vmem:[#allocation2 + $0x168] sm:$0xff]  }
  0x24   :  { %v2755_v54 = vld [vmem:[#allocation2 + $0x118] sm:$0xff]   ;;  %v2759_v58 = vld [vmem:[#allocation2 + $0x120] sm:$0xff]   ;;  %v2762_v61 = vld [vmem:[#allocation2 + $0x1e8] sm:$0xff]  }
  0x25   :  { %2451 = vmatpush3.bf16.msra.mxu0 %v2727_v18  ;;  %v2756_v55 = vld [vmem:[#allocation2 + $0x198] sm:$0xff]   ;;  %v2760_v59 = vld [vmem:[#allocation2 + $0x1a0] sm:$0xff]   ;;  %v2763_v62 = vld [vmem:[#allocation2 + $0x128] sm:$0xff]  }
  0x26   :  { %2473 = vmatpush3.bf16.msra.mxu1 %v2728_v19  ;;  %2452 = vmatprep.subr.bf16.mxu0 %v2729_v20  ;;  %v2764_v63 = vld [vmem:[#allocation2 + $0x1a8] sm:$0xff]   ;;  %v2765_v0 = vld [vmem:[#allocation2 + $0x170] sm:$0xff]   ;;  %v2769_v4 = vld [vmem:[#allocation2 + $0x178] sm:$0xff]  }
  0x27   :  { %2474 = vmatprep.subr.bf16.mxu1 %v2730_v21  ;;  %v2766_v1 = vld [vmem:[#allocation2 + $0x1f0] sm:$0xff]   ;;  %v2770_v5 = vld [vmem:[#allocation2 + $0x1f8] sm:$0xff]   ;;  %v2773_v16 = vld [vmem:[#allocation2 + $0x240] sm:$0xff]  }
  0x28   :  { %v2767_v2 = vld [vmem:[#allocation2 + $0x130] sm:$0xff]   ;;  %v2771_v6 = vld [vmem:[#allocation2 + $0x138] sm:$0xff]   ;;  %v2774_v17 = vld [vmem:[#allocation2 + $0x2c0] sm:$0xff]  }
  0x29   :  { %2453 = vmatpush3.bf16.msra.mxu0 %v2731_v22  ;;  %v2768_v3 = vld [vmem:[#allocation2 + $0x1b0] sm:$0xff]   ;;  %v2772_v7 = vld [vmem:[#allocation2 + $0x1b8] sm:$0xff]   ;;  %v2775_v18 = vld [vmem:[#allocation2 + $0x200] sm:$0xff]  }
  0x2a   :  { %2475 = vmatpush3.bf16.msra.mxu1 %v2732_v23  ;;  %2454 = vmatprep.subr.bf16.mxu0 %v2733_v24  ;;  %v31_v8 = vld [vmem:[%s3045_s0 + $0x10] sm:$0xff]  ;;  %v32_v12 = vld [vmem:[%s3045_s0 + $0x18] sm:$0xff]  ;;  %v2776_v19 = vld [vmem:[#allocation2 + $0x280] sm:$0xff]  }
  0x2b   :  { %2476 = vmatprep.subr.bf16.mxu1 %v2734_v25  ;;  %v43_v9 = vld [vmem:[%s3045_s0 + $0x70] sm:$0xff]  ;;  %v44_v13 = vld [vmem:[%s3045_s0 + $0x78] sm:$0xff]  ;;  %v2777_v20 = vld [vmem:[#allocation2 + $0x248] sm:$0xff]  }
  0x2c   :  { %v2230_v10 = vcombine.low %v31_v8, %v43_v9  ;;  %v2231_v11 = vcombine.high %v31_v8, %v43_v9  ;;  %v2232_v14 = vcombine.low %v32_v12, %v44_v13  ;;  %v2233_v15 = vcombine.high %v32_v12, %v44_v13  ;;  %v2778_v21 = vld [vmem:[#allocation2 + $0x2c8] sm:$0xff]   ;;  %v2781_v24 = vld [vmem:[#allocation2 + $0x250] sm:$0xff]   ;;  %v2789_v32 = vld [vmem:[#allocation2 + $0x260] sm:$0xff]  }
  0x2d   :  { %2455 = vmatpush3.bf16.msra.mxu0 %v2735_v26  ;;  %v2779_v22 = vld [vmem:[#allocation2 + $0x208] sm:$0xff]   ;;  %v2782_v25 = vld [vmem:[#allocation2 + $0x2d0] sm:$0xff]   ;;  %v2790_v33 = vld [vmem:[#allocation2 + $0x2e0] sm:$0xff]  }
  0x2e   :  { %2477 = vmatpush3.bf16.msra.mxu1 %v2736_v27  ;;  %2456 = vmatprep.subr.bf16.mxu0 %v2737_v28  ;;  %v2780_v23 = vld [vmem:[#allocation2 + $0x288] sm:$0xff]   ;;  %v2783_v26 = vld [vmem:[#allocation2 + $0x210] sm:$0xff]   ;;  %v2785_v28 = vld [vmem:[#allocation2 + $0x258] sm:$0xff]  }
  0x2f   :  { %2478 = vmatprep.subr.bf16.mxu1 %v2738_v29  ;;  %v2784_v27 = vld [vmem:[#allocation2 + $0x290] sm:$0xff]   ;;  %v2786_v29 = vld [vmem:[#allocation2 + $0x2d8] sm:$0xff]   ;;  %v2791_v34 = vld [vmem:[#allocation2 + $0x220] sm:$0xff]  }
  0x30   :  { %v2793_v36 = vld [vmem:[#allocation2 + $0x268] sm:$0xff]   ;;  %v2821_v8 = vld [vmem:[#allocation2 + $0x360] sm:$0xff]  }
  0x31   :  { %2457 = vmatpush3.bf16.msra.mxu0 %v2739_v30  ;;  %v2787_v30 = vld [vmem:[#allocation2 + $0x218] sm:$0xff]   ;;  %v2794_v37 = vld [vmem:[#allocation2 + $0x2e8] sm:$0xff]   ;;  %v2822_v9 = vld [vmem:[#allocation2 + $0x3e0] sm:$0xff]  }
  0x32   :  { %2479 = vmatpush3.bf16.msra.mxu1 %v2740_v31  ;;  %2486 = vmatprep.subr.bf16.mxu0 %v2741_v40  ;;  %v2788_v31 = vld [vmem:[#allocation2 + $0x298] sm:$0xff]   ;;  %v2796_v39 = vld [vmem:[#allocation2 + $0x2a8] sm:$0xff]   ;;  %v2797_v40 = vld [vmem:[#allocation2 + $0x270] sm:$0xff]  }
  0x33   :  { %2508 = vmatprep.subr.bf16.mxu1 %v2742_v41  ;;  %v2798_v41 = vld [vmem:[#allocation2 + $0x2f0] sm:$0xff]   ;;  %v2825_v12 = vld [vmem:[#allocation2 + $0x368] sm:$0xff]  }
  0x34   :  { %1749 = vmatmul.mubr.bf16.vlgmr.msra.gmra.mrb[0].mxu0 %v2226_v35  ;;  %v2792_v35 = vld [vmem:[#allocation2 + $0x2a0] sm:$0xff]   ;;  %v2826_v13 = vld [vmem:[#allocation2 + $0x3e8] sm:$0xff]  }
  0x35   :  { %1790 = vmatmul.mubr.bf16.vlgmr.msra.gmra.mrb[0].mxu1 %v2228_v38  ;;  %2487 = vmatpush3.bf16.msra.mxu0 %v2743_v42  ;;  %v2795_v38 = vld [vmem:[#allocation2 + $0x228] sm:$0xff]   ;;  %v2799_v42 = vld [vmem:[#allocation2 + $0x230] sm:$0xff]  }
  0x36   :  { %2509 = vmatpush3.bf16.msra.mxu1 %v2744_v43  ;;  %2488 = vmatprep.subr.bf16.mxu0 %v2745_v44  ;;  %v2800_v43 = vld [vmem:[#allocation2 + $0x2b0] sm:$0xff]   ;;  %v2801_v44 = vld [vmem:[#allocation2 + $0x278] sm:$0xff]  }
  0x37   :  { %2510 = vmatprep.subr.bf16.mxu1 %v2746_v45  ;;  %1830 = vmatprep.mubr.bf16.mxu0 %v2231_v11  ;;  %v2802_v45 = vld [vmem:[#allocation2 + $0x2f8] sm:$0xff]   ;;  %v2824_v11 = vld [vmem:[#allocation2 + $0x3a0] sm:$0xff]  }
  0x38   :  { %1871 = vmatprep.mubr.bf16.mxu1 %v2233_v15  ;;  %v2828_v15 = vld [vmem:[#allocation2 + $0x3a8] sm:$0xff]  }
  0x39   :  { %2489 = vmatpush3.bf16.msra.mxu0 %v2747_v46  ;;  %v2803_v46 = vld [vmem:[#allocation2 + $0x238] sm:$0xff]  }
  0x3a   :  { %2511 = vmatpush3.bf16.msra.mxu1 %v2748_v47  ;;  %2490 = vmatprep.subr.bf16.mxu0 %v2749_v48  ;;  %v2804_v47 = vld [vmem:[#allocation2 + $0x2b8] sm:$0xff]   ;;  %v33_v48 = vld [vmem:[%s3045_s0 + $0x20] sm:$0xff] }
  0x3b   :  { %2512 = vmatprep.subr.bf16.mxu1 %v2750_v49  ;;  %v45_v49 = vld [vmem:[%s3045_s0 + $0x80] sm:$0xff] }
  0x3d   :  { %2491 = vmatpush3.bf16.msra.mxu0 %v2751_v50  ;;  %v34_v50 = vld [vmem:[%s3045_s0 + $0x28] sm:$0xff] }
  0x3e   :  { %2513 = vmatpush3.bf16.msra.mxu1 %v2752_v51  ;;  %2492 = vmatprep.subr.bf16.mxu0 %v2753_v52  ;;  %v46_v51 = vld [vmem:[%s3045_s0 + $0x88] sm:$0xff]  ;;  %v2234_v52 = vcombine.low %v33_v48, %v45_v49 }
  0x3f   :  { %2514 = vmatprep.subr.bf16.mxu1 %v2754_v53  ;;  %v2235_v53 = vcombine.high %v33_v48, %v45_v49  ;;  %v2853_v48 = vld [vmem:[#allocation2 + $0x460] sm:$0xff]  }
  0x40   :  { %v2854_v49 = vld [vmem:[#allocation2 + $0x4e0] sm:$0xff]  }
  0x41   :  { %2493 = vmatpush3.bf16.msra.mxu0 %v2755_v54  ;;  %v2236_v54 = vcombine.low %v34_v50, %v46_v51 }
  0x42   :  { %2515 = vmatpush3.bf16.msra.mxu1 %v2756_v55  ;;  %2494 = vmatprep.subr.bf16.mxu0 %v2757_v56  ;;  %v2237_v55 = vcombine.high %v34_v50, %v46_v51  ;;  %v2805_v56 = vld [vmem:[#allocation2 + $0x340] sm:$0xff]  }
  0x43   :  { %2516 = vmatprep.subr.bf16.mxu1 %v2758_v57  ;;  %v2806_v57 = vld [vmem:[#allocation2 + $0x3c0] sm:$0xff]  }
  0x44   :  { %v2855_v50 = vld [vmem:[#allocation2 + $0x420] sm:$0xff]  }
  0x45   :  { %2495 = vmatpush3.bf16.msra.mxu0 %v2759_v58  ;;  %v2807_v58 = vld [vmem:[#allocation2 + $0x300] sm:$0xff]  }
  0x46   :  { %2517 = vmatpush3.bf16.msra.mxu1 %v2760_v59  ;;  %2496 = vmatprep.subr.bf16.mxu0 %v2761_v60  ;;  %v2808_v59 = vld [vmem:[#allocation2 + $0x380] sm:$0xff]   ;;  %v2809_v60 = vld [vmem:[#allocation2 + $0x348] sm:$0xff]  }
  0x47   :  { %2518 = vmatprep.subr.bf16.mxu1 %v2762_v61  ;;  %v2810_v61 = vld [vmem:[#allocation2 + $0x3c8] sm:$0xff]   ;;  %v2856_v51 = vld [vmem:[#allocation2 + $0x4a0] sm:$0xff]  }
  0x49   :  { %2497 = vmatpush3.bf16.msra.mxu0 %v2763_v62  ;;  %v2811_v62 = vld [vmem:[#allocation2 + $0x308] sm:$0xff]  }
  0x4a   :  { %2519 = vmatpush3.bf16.msra.mxu1 %v2764_v63  ;;  %2498 = vmatprep.subr.bf16.mxu0 %v2765_v0  ;;  %v2812_v63 = vld [vmem:[#allocation2 + $0x388] sm:$0xff]   ;;  %v2813_v0 = vld [vmem:[#allocation2 + $0x350] sm:$0xff]  }
  0x4b   :  { %2520 = vmatprep.subr.bf16.mxu1 %v2766_v1  ;;  %v2814_v1 = vld [vmem:[#allocation2 + $0x3d0] sm:$0xff]  }
  0x4d   :  { %2499 = vmatpush3.bf16.msra.mxu0 %v2767_v2  ;;  %v2815_v2 = vld [vmem:[#allocation2 + $0x310] sm:$0xff]  }
  0x4e   :  { %2521 = vmatpush3.bf16.msra.mxu1 %v2768_v3  ;;  %2500 = vmatprep.subr.bf16.mxu0 %v2769_v4  ;;  %v2816_v3 = vld [vmem:[#allocation2 + $0x390] sm:$0xff]   ;;  %v2817_v4 = vld [vmem:[#allocation2 + $0x358] sm:$0xff]  }
  0x4f   :  { %2522 = vmatprep.subr.bf16.mxu1 %v2770_v5  ;;  %v2818_v5 = vld [vmem:[#allocation2 + $0x3d8] sm:$0xff]  }
  0x51   :  { %2501 = vmatpush3.bf16.msra.mxu0 %v2771_v6  ;;  %v2819_v6 = vld [vmem:[#allocation2 + $0x318] sm:$0xff]  }
  0x52   :  { %2523 = vmatpush3.bf16.msra.mxu1 %v2772_v7  ;;  %2530 = vmatprep.subr.bf16.mxu0 %v2773_v16  ;;  %v2820_v7 = vld [vmem:[#allocation2 + $0x398] sm:$0xff]   ;;  %v2829_v16 = vld [vmem:[#allocation2 + $0x370] sm:$0xff]  }
  0x53   :  { %2552 = vmatprep.subr.bf16.mxu1 %v2774_v17  ;;  %v2830_v17 = vld [vmem:[#allocation2 + $0x3f0] sm:$0xff]  }
  0x54   :  { %1831 = vmatmul.mubr.bf16.vlgmr.msra.gmra.mrb[4].mxu0 %v2230_v10  ;;  %v2823_v10 = vld [vmem:[#allocation2 + $0x320] sm:$0xff]  }
  0x55   :  { %1872 = vmatmul.mubr.bf16.vlgmr.msra.gmra.mrb[4].mxu1 %v2232_v14  ;;  %2531 = vmatpush3.bf16.msra.mxu0 %v2775_v18  ;;  %v2827_v14 = vld [vmem:[#allocation2 + $0x328] sm:$0xff]   ;;  %v2831_v18 = vld [vmem:[#allocation2 + $0x330] sm:$0xff]  }
  0x56   :  { %2553 = vmatpush3.bf16.msra.mxu1 %v2776_v19  ;;  %2532 = vmatprep.subr.bf16.mxu0 %v2777_v20  ;;  %v2832_v19 = vld [vmem:[#allocation2 + $0x3b0] sm:$0xff]   ;;  %v2833_v20 = vld [vmem:[#allocation2 + $0x378] sm:$0xff]  }
  0x57   :  { %2554 = vmatprep.subr.bf16.mxu1 %v2778_v21  ;;  %1912 = vmatprep.mubr.bf16.mxu0 %v2235_v53  ;;  %v2834_v21 = vld [vmem:[#allocation2 + $0x3f8] sm:$0xff]   ;;  %v2858_v53 = vld [vmem:[#allocation2 + $0x4e8] sm:$0xff]  }
  0x58   :  { %1953 = vmatprep.mubr.bf16.mxu1 %v2237_v55  ;;  %v2860_v55 = vld [vmem:[#allocation2 + $0x4a8] sm:$0xff]  }
  0x59   :  { %2533 = vmatpush3.bf16.msra.mxu0 %v2779_v22  ;;  %v2835_v22 = vld [vmem:[#allocation2 + $0x338] sm:$0xff]  }
  0x5a   :  { %2555 = vmatpush3.bf16.msra.mxu1 %v2780_v23  ;;  %2534 = vmatprep.subr.bf16.mxu0 %v2781_v24  ;;  %v2836_v23 = vld [vmem:[#allocation2 + $0x3b8] sm:$0xff]   ;;  %v35_v24 = vld [vmem:[%s3045_s0 + $0x30] sm:$0xff] }
  0x5b   :  { %2556 = vmatprep.subr.bf16.mxu1 %v2782_v25  ;;  %v47_v25 = vld [vmem:[%s3045_s0 + $0x90] sm:$0xff] }
  0x5d   :  { %2535 = vmatpush3.bf16.msra.mxu0 %v2783_v26  ;;  %v36_v26 = vld [vmem:[%s3045_s0 + $0x38] sm:$0xff] }
  0x5e   :  { %2557 = vmatpush3.bf16.msra.mxu1 %v2784_v27  ;;  %2536 = vmatprep.subr.bf16.mxu0 %v2785_v28  ;;  %v2238_v27 = vcombine.low %v35_v24, %v47_v25  ;;  %v2239_v28 = vcombine.high %v35_v24, %v47_v25  ;;  %v2885_v24 = vld [vmem:[#allocation2 + $0x560] sm:$0xff]  }
  0x5f   :  { %2558 = vmatprep.subr.bf16.mxu1 %v2786_v29  ;;  %v48_v29 = vld [vmem:[%s3045_s0 + $0x98] sm:$0xff]  ;;  %v2886_v25 = vld [vmem:[#allocation2 + $0x5e0] sm:$0xff]  }
  0x61   :  { %2537 = vmatpush3.bf16.msra.mxu0 %v2787_v30  ;;  %v2240_v30 = vcombine.low %v36_v26, %v48_v29 }
  0x62   :  { %2559 = vmatpush3.bf16.msra.mxu1 %v2788_v31  ;;  %2538 = vmatprep.subr.bf16.mxu0 %v2789_v32  ;;  %v2241_v31 = vcombine.high %v36_v26, %v48_v29  ;;  %v2837_v32 = vld [vmem:[#allocation2 + $0x440] sm:$0xff]   ;;  %v2890_v29 = vld [vmem:[#allocation2 + $0x5e8] sm:$0xff]  }
  0x63   :  { %2560 = vmatprep.subr.bf16.mxu1 %v2790_v33  ;;  %v2838_v33 = vld [vmem:[#allocation2 + $0x4c0] sm:$0xff]  }
  0x64   :  { %v2887_v26 = vld [vmem:[#allocation2 + $0x520] sm:$0xff]  }
  0x65   :  { %2539 = vmatpush3.bf16.msra.mxu0 %v2791_v34  ;;  %v2839_v34 = vld [vmem:[#allocation2 + $0x400] sm:$0xff]  }
  0x66   :  { %2561 = vmatpush3.bf16.msra.mxu1 %v2792_v35  ;;  %2540 = vmatprep.subr.bf16.mxu0 %v2793_v36  ;;  %v2840_v35 = vld [vmem:[#allocation2 + $0x480] sm:$0xff]   ;;  %v2841_v36 = vld [vmem:[#allocation2 + $0x448] sm:$0xff]  }
  0x67   :  { %2562 = vmatprep.subr.bf16.mxu1 %v2794_v37  ;;  %v2842_v37 = vld [vmem:[#allocation2 + $0x4c8] sm:$0xff]  }
  0x69   :  { %2541 = vmatpush3.bf16.msra.mxu0 %v2795_v38  ;;  %v2843_v38 = vld [vmem:[#allocation2 + $0x408] sm:$0xff]  }
  0x6a   :  { %2563 = vmatpush3.bf16.msra.mxu1 %v2796_v39  ;;  %2542 = vmatprep.subr.bf16.mxu0 %v2797_v40  ;;  %v2844_v39 = vld [vmem:[#allocation2 + $0x488] sm:$0xff]   ;;  %v2845_v40 = vld [vmem:[#allocation2 + $0x450] sm:$0xff]  }
  0x6b   :  { %2564 = vmatprep.subr.bf16.mxu1 %v2798_v41  ;;  %v2846_v41 = vld [vmem:[#allocation2 + $0x4d0] sm:$0xff]  }
  0x6d   :  { %2543 = vmatpush3.bf16.msra.mxu0 %v2799_v42  ;;  %v2847_v42 = vld [vmem:[#allocation2 + $0x410] sm:$0xff]  }
  0x6e   :  { %2565 = vmatpush3.bf16.msra.mxu1 %v2800_v43  ;;  %2544 = vmatprep.subr.bf16.mxu0 %v2801_v44  ;;  %v2848_v43 = vld [vmem:[#allocation2 + $0x490] sm:$0xff]   ;;  %v2849_v44 = vld [vmem:[#allocation2 + $0x458] sm:$0xff]  }
  0x6f   :  { %2566 = vmatprep.subr.bf16.mxu1 %v2802_v45  ;;  %v2850_v45 = vld [vmem:[#allocation2 + $0x4d8] sm:$0xff]  }
  0x71   :  { %2545 = vmatpush3.bf16.msra.mxu0 %v2803_v46  ;;  %v2851_v46 = vld [vmem:[#allocation2 + $0x418] sm:$0xff]  }
  0x72   :  { %2567 = vmatpush3.bf16.msra.mxu1 %v2804_v47  ;;  %2574 = vmatprep.subr.bf16.mxu0 %v2805_v56  ;;  %v2852_v47 = vld [vmem:[#allocation2 + $0x498] sm:$0xff]   ;;  %v2861_v56 = vld [vmem:[#allocation2 + $0x470] sm:$0xff]  }
  0x73   :  { %2596 = vmatprep.subr.bf16.mxu1 %v2806_v57  ;;  %v2862_v57 = vld [vmem:[#allocation2 + $0x4f0] sm:$0xff]  }
  0x74   :  { %1913 = vmatmul.mubr.bf16.vlgmr.msra.gmra.mrb[8].mxu0 %v2234_v52  ;;  %v2857_v52 = vld [vmem:[#allocation2 + $0x468] sm:$0xff]  }
  0x75   :  { %1954 = vmatmul.mubr.bf16.vlgmr.msra.gmra.mrb[8].mxu1 %v2236_v54  ;;  %2575 = vmatpush3.bf16.msra.mxu0 %v2807_v58  ;;  %v2859_v54 = vld [vmem:[#allocation2 + $0x428] sm:$0xff]   ;;  %v2863_v58 = vld [vmem:[#allocation2 + $0x430] sm:$0xff]  }
  0x76   :  { %2597 = vmatpush3.bf16.msra.mxu1 %v2808_v59  ;;  %2576 = vmatprep.subr.bf16.mxu0 %v2809_v60  ;;  %v2864_v59 = vld [vmem:[#allocation2 + $0x4b0] sm:$0xff]   ;;  %v2865_v60 = vld [vmem:[#allocation2 + $0x478] sm:$0xff]  }
  0x77   :  { %2598 = vmatprep.subr.bf16.mxu1 %v2810_v61  ;;  %1994 = vmatprep.mubr.bf16.mxu0 %v2239_v28  ;;  %v2866_v61 = vld [vmem:[#allocation2 + $0x4f8] sm:$0xff]   ;;  %v2889_v28 = vld [vmem:[#allocation2 + $0x568] sm:$0xff]  }
  0x78   :  { %2035 = vmatprep.mubr.bf16.mxu1 %v2241_v31  ;;  %v2892_v31 = vld [vmem:[#allocation2 + $0x5a8] sm:$0xff]  }
  0x79   :  { %2577 = vmatpush3.bf16.msra.mxu0 %v2811_v62  ;;  %v2867_v62 = vld [vmem:[#allocation2 + $0x438] sm:$0xff]  }
  0x7a   :  { %2599 = vmatpush3.bf16.msra.mxu1 %v2812_v63  ;;  %2578 = vmatprep.subr.bf16.mxu0 %v2813_v0  ;;  %v2868_v63 = vld [vmem:[#allocation2 + $0x4b8] sm:$0xff]   ;;  %v37_v0 = vld [vmem:[%s3045_s0 + $0x40] sm:$0xff] }
  0x7b   :  { %2600 = vmatprep.subr.bf16.mxu1 %v2814_v1  ;;  %v49_v1 = vld [vmem:[%s3045_s0 + $0xa0] sm:$0xff] }
  0x7d   :  { %2579 = vmatpush3.bf16.msra.mxu0 %v2815_v2  ;;  %v2242_v2 = vcombine.low %v37_v0, %v49_v1 }
  0x7e   :  { %2601 = vmatpush3.bf16.msra.mxu1 %v2816_v3  ;;  %2580 = vmatprep.subr.bf16.mxu0 %v2817_v4  ;;  %v2243_v3 = vcombine.high %v37_v0, %v49_v1  ;;  %v38_v4 = vld [vmem:[%s3045_s0 + $0x48] sm:$0xff] }
  0x7f   :  { %2602 = vmatprep.subr.bf16.mxu1 %v2818_v5  ;;  %v50_v5 = vld [vmem:[%s3045_s0 + $0xa8] sm:$0xff] }
  0x81   :  { %2581 = vmatpush3.bf16.msra.mxu0 %v2819_v6  ;;  %v2244_v6 = vcombine.low %v38_v4, %v50_v5 }
  0x82   :  { %2603 = vmatpush3.bf16.msra.mxu1 %v2820_v7  ;;  %2582 = vmatprep.subr.bf16.mxu0 %v2821_v8  ;;  %v2245_v7 = vcombine.high %v38_v4, %v50_v5  ;;  %v2869_v8 = vld [vmem:[#allocation2 + $0x540] sm:$0xff]  }
  0x83   :  { %2604 = vmatprep.subr.bf16.mxu1 %v2822_v9  ;;  %v2870_v9 = vld [vmem:[#allocation2 + $0x5c0] sm:$0xff]  }
  0x85   :  { %2583 = vmatpush3.bf16.msra.mxu0 %v2823_v10  ;;  %v2871_v10 = vld [vmem:[#allocation2 + $0x500] sm:$0xff]  }
  0x86   :  { %2605 = vmatpush3.bf16.msra.mxu1 %v2824_v11  ;;  %2584 = vmatprep.subr.bf16.mxu0 %v2825_v12  ;;  %v2872_v11 = vld [vmem:[#allocation2 + $0x580] sm:$0xff]   ;;  %v2873_v12 = vld [vmem:[#allocation2 + $0x548] sm:$0xff]  }
  0x87   :  { %2606 = vmatprep.subr.bf16.mxu1 %v2826_v13  ;;  %v2874_v13 = vld [vmem:[#allocation2 + $0x5c8] sm:$0xff]  }
  0x89   :  { %2585 = vmatpush3.bf16.msra.mxu0 %v2827_v14  ;;  %v2875_v14 = vld [vmem:[#allocation2 + $0x508] sm:$0xff]  }
  0x8a   :  { %2607 = vmatpush3.bf16.msra.mxu1 %v2828_v15  ;;  %2586 = vmatprep.subr.bf16.mxu0 %v2829_v16  ;;  %v2876_v15 = vld [vmem:[#allocation2 + $0x588] sm:$0xff]   ;;  %v2877_v16 = vld [vmem:[#allocation2 + $0x550] sm:$0xff]  }
  0x8b   :  { %2608 = vmatprep.subr.bf16.mxu1 %v2830_v17  ;;  %v2878_v17 = vld [vmem:[#allocation2 + $0x5d0] sm:$0xff]  }
  0x8d   :  { %2587 = vmatpush3.bf16.msra.mxu0 %v2831_v18  ;;  %v2879_v18 = vld [vmem:[#allocation2 + $0x510] sm:$0xff]  }
  0x8e   :  { %2609 = vmatpush3.bf16.msra.mxu1 %v2832_v19  ;;  %2588 = vmatprep.subr.bf16.mxu0 %v2833_v20  ;;  %v2880_v19 = vld [vmem:[#allocation2 + $0x590] sm:$0xff]   ;;  %v2881_v20 = vld [vmem:[#allocation2 + $0x558] sm:$0xff]  }
  0x8f   :  { %2610 = vmatprep.subr.bf16.mxu1 %v2834_v21  ;;  %v2882_v21 = vld [vmem:[#allocation2 + $0x5d8] sm:$0xff]  }
  0x91   :  { %2589 = vmatpush3.bf16.msra.mxu0 %v2835_v22  ;;  %v2883_v22 = vld [vmem:[#allocation2 + $0x518] sm:$0xff]  }
  0x92   :  { %2611 = vmatpush3.bf16.msra.mxu1 %v2836_v23  ;;  %2618 = vmatprep.subr.bf16.mxu0 %v2837_v32  ;;  %v2884_v23 = vld [vmem:[#allocation2 + $0x598] sm:$0xff]   ;;  %v2893_v32 = vld [vmem:[#allocation2 + $0x570] sm:$0xff]  }
  0x93   :  { %2640 = vmatprep.subr.bf16.mxu1 %v2838_v33  ;;  %v2894_v33 = vld [vmem:[#allocation2 + $0x5f0] sm:$0xff]  }
  0x94   :  { %1995 = vmatmul.mubr.bf16.vlgmr.msra.gmra.mrb[12].mxu0 %v2238_v27  ;;  %v2888_v27 = vld [vmem:[#allocation2 + $0x5a0] sm:$0xff]  }
  0x95   :  { %2036 = vmatmul.mubr.bf16.vlgmr.msra.gmra.mrb[12].mxu1 %v2240_v30  ;;  %2619 = vmatpush3.bf16.msra.mxu0 %v2839_v34  ;;  %v2891_v30 = vld [vmem:[#allocation2 + $0x528] sm:$0xff]   ;;  %v2895_v34 = vld [vmem:[#allocation2 + $0x530] sm:$0xff]  }
  0x96   :  { %2641 = vmatpush3.bf16.msra.mxu1 %v2840_v35  ;;  %2620 = vmatprep.subr.bf16.mxu0 %v2841_v36  ;;  %v2896_v35 = vld [vmem:[#allocation2 + $0x5b0] sm:$0xff]   ;;  %v2897_v36 = vld [vmem:[#allocation2 + $0x578] sm:$0xff]  }
  0x97   :  { %2642 = vmatprep.subr.bf16.mxu1 %v2842_v37  ;;  %2076 = vmatprep.mubr.bf16.mxu0 %v2243_v3  ;;  %v2898_v37 = vld [vmem:[#allocation2 + $0x5f8] sm:$0xff]  }
  0x98   :  { %2117 = vmatprep.mubr.bf16.mxu1 %v2245_v7 }
  0x99   :  { %2621 = vmatpush3.bf16.msra.mxu0 %v2843_v38  ;;  %v2899_v38 = vld [vmem:[#allocation2 + $0x538] sm:$0xff]  }
  0x9a   :  { %2643 = vmatpush3.bf16.msra.mxu1 %v2844_v39  ;;  %2622 = vmatprep.subr.bf16.mxu0 %v2845_v40  ;;  %v2900_v39 = vld [vmem:[#allocation2 + $0x5b8] sm:$0xff]   ;;  %v39_v40 = vld [vmem:[%s3045_s0 + $0x50] sm:$0xff] }
  0x9b   :  { %2644 = vmatprep.subr.bf16.mxu1 %v2846_v41  ;;  %v51_v41 = vld [vmem:[%s3045_s0 + $0xb0] sm:$0xff] }
  0x9d   :  { %2623 = vmatpush3.bf16.msra.mxu0 %v2847_v42  ;;  %v40_v42 = vld [vmem:[%s3045_s0 + $0x58] sm:$0xff] }
  0x9e   :  { %2645 = vmatpush3.bf16.msra.mxu1 %v2848_v43  ;;  %2624 = vmatprep.subr.bf16.mxu0 %v2849_v44  ;;  %v52_v43 = vld [vmem:[%s3045_s0 + $0xb8] sm:$0xff]  ;;  %v2246_v44 = vcombine.low %v39_v40, %v51_v41 }
  0x9f   :  { %2646 = vmatprep.subr.bf16.mxu1 %v2850_v45  ;;  %v2247_v45 = vcombine.high %v39_v40, %v51_v41 }
  0xa1   :  { %2625 = vmatpush3.bf16.msra.mxu0 %v2851_v46  ;;  %v2248_v46 = vcombine.low %v40_v42, %v52_v43 }
  0xa2   :  { %2647 = vmatpush3.bf16.msra.mxu1 %v2852_v47  ;;  %2626 = vmatprep.subr.bf16.mxu0 %v2853_v48  ;;  %v2249_v47 = vcombine.high %v40_v42, %v52_v43 }
  0xa3   :  { %2648 = vmatprep.subr.bf16.mxu1 %v2854_v49 }
  0xa5   :  { %2627 = vmatpush3.bf16.msra.mxu0 %v2855_v50  ;;  %v2225_v50 = vld [vmem:[%s3047_s2] ss:$0 sm:$0xff] }
  0xa6   :  { %2649 = vmatpush3.bf16.msra.mxu1 %v2856_v51  ;;  %2628 = vmatprep.subr.bf16.mxu0 %v2857_v52 }
  0xa7   :  { %2650 = vmatprep.subr.bf16.mxu1 %v2858_v53 }
  0xa9   :  { %2629 = vmatpush3.bf16.msra.mxu0 %v2859_v54 }
  0xaa   :  { %2651 = vmatpush3.bf16.msra.mxu1 %v2860_v55  ;;  %2630 = vmatprep.subr.bf16.mxu0 %v2861_v56 }
  0xab   :  { %2652 = vmatprep.subr.bf16.mxu1 %v2862_v57 }
  0xad   :  { %2631 = vmatpush3.bf16.msra.mxu0 %v2863_v58 }
  0xae   :  { %2653 = vmatpush3.bf16.msra.mxu1 %v2864_v59  ;;  %2632 = vmatprep.subr.bf16.mxu0 %v2865_v60 }
  0xaf   :  { %2654 = vmatprep.subr.bf16.mxu1 %v2866_v61 }
  0xb1   :  { %2633 = vmatpush3.bf16.msra.mxu0 %v2867_v62 }
  0xb2   :  { %2655 = vmatpush3.bf16.msra.mxu1 %v2868_v63  ;;  %2662 = vmatprep.subr.bf16.mxu0 %v2869_v8 }
  0xb3   :  { %2684 = vmatprep.subr.bf16.mxu1 %v2870_v9 }
  0xb4   :  { %2077 = vmatmul.mubr.bf16.vlgmr.msra.gmra.mrb[16].mxu0 %v2242_v2 }
  0xb5   :  { %2118 = vmatmul.mubr.bf16.vlgmr.msra.gmra.mrb[16].mxu1 %v2244_v6  ;;  %2663 = vmatpush3.bf16.msra.mxu0 %v2871_v10 }
  0xb6   :  { %2685 = vmatpush3.bf16.msra.mxu1 %v2872_v11  ;;  %2664 = vmatprep.subr.bf16.mxu0 %v2873_v12 }
  0xb7   :  { %2686 = vmatprep.subr.bf16.mxu1 %v2874_v13  ;;  %2158 = vmatprep.mubr.bf16.mxu0 %v2247_v45 }
  0xb8   :  { %2199 = vmatprep.mubr.bf16.mxu1 %v2249_v47 }
  0xb9   :  { %2665 = vmatpush3.bf16.msra.mxu0 %v2875_v14 }
  0xba   :  { %2687 = vmatpush3.bf16.msra.mxu1 %v2876_v15  ;;  %2666 = vmatprep.subr.bf16.mxu0 %v2877_v16 }
  0xbb   :  { %2688 = vmatprep.subr.bf16.mxu1 %v2878_v17 }
  0xbd   :  { %2667 = vmatpush3.bf16.msra.mxu0 %v2879_v18 }
  0xbe   :  { %2689 = vmatpush3.bf16.msra.mxu1 %v2880_v19  ;;  %2668 = vmatprep.subr.bf16.mxu0 %v2881_v20 }
  0xbf   :  { %2690 = vmatprep.subr.bf16.mxu1 %v2882_v21 }
  0xc1   :  { %2669 = vmatpush3.bf16.msra.mxu0 %v2883_v22 }
  0xc2   :  { %2691 = vmatpush3.bf16.msra.mxu1 %v2884_v23  ;;  %2670 = vmatprep.subr.bf16.mxu0 %v2885_v24 }
  0xc3   :  { %2692 = vmatprep.subr.bf16.mxu1 %v2886_v25 }
  0xc5   :  { %2671 = vmatpush3.bf16.msra.mxu0 %v2887_v26 }
  0xc6   :  { %2693 = vmatpush3.bf16.msra.mxu1 %v2888_v27  ;;  %2672 = vmatprep.subr.bf16.mxu0 %v2889_v28 }
  0xc7   :  { %2694 = vmatprep.subr.bf16.mxu1 %v2890_v29 }
  0xc9   :  { %2673 = vmatpush3.bf16.msra.mxu0 %v2891_v30 }
  0xca   :  { %2695 = vmatpush3.bf16.msra.mxu1 %v2892_v31  ;;  %2674 = vmatprep.subr.bf16.mxu0 %v2893_v32 }
  0xcb   :  { %2696 = vmatprep.subr.bf16.mxu1 %v2894_v33 }
  0xcd   :  { %2675 = vmatpush3.bf16.msra.mxu0 %v2895_v34 }
  0xce   :  { %2697 = vmatpush3.bf16.msra.mxu1 %v2896_v35  ;;  %2676 = vmatprep.subr.bf16.mxu0 %v2897_v36 }
  0xcf   :  { %2698 = vmatprep.subr.bf16.mxu1 %v2898_v37 }
  0xd1   :  { %2677 = vmatpush3.bf16.msra.mxu0 %v2899_v38 }
  0xd2   :  { %2699 = vmatpush3.bf16.msra.mxu1 %v2900_v39 }
  0xd4   :  { %2159 = vmatmul.mubr.bf16.vlgmr.msra.gmra.mrb[20].mxu0 %v2246_v44 }
  0xd5   :  { %2200 = vmatmul.mubr.bf16.vlgmr.msra.gmra.mrb[20].mxu1 %v2248_v46 }
 0x107   :  { %v2458_v48 = vpop.f32.mrb[0].mxu0 }
 0x108   :  { %v2480_v49 = vpop.f32.mrb[0].mxu1  ;;  %v2459_v51 = vpop.f32.mrb[1].mxu0 }
 0x109   :  { %v2460_v52 = vadd.f32 %v2459_v51, %v2458_v48  ;;  %v2481_v53 = vpop.f32.mrb[1].mxu1  ;;  %v2461_v54 = vpop.f32.mrb[2].mxu0 }
 0x10a   :  { %v2482_v55 = vadd.f32 %v2481_v53, %v2480_v49  ;;  %v2483_v56 = vpop.f32.mrb[2].mxu1  ;;  %v2462_v57 = vpop.f32.mrb[3].mxu0 }
 0x10b   :  { %v1751_v58 = vadd.f32 %v2460_v52, %v2225_v50  ;;  %v2463_v59 = vadd.f32 %v2462_v57, %v2461_v54  ;;  %v2484_v60 = vpop.f32.mrb[3].mxu1 }
 0x10c   :  { %v2485_v61 = vadd.f32 %v2484_v60, %v2483_v56 }
 0x10d   :  { %v1792_v62 = vadd.f32 %v2482_v55, %v1751_v58  ;;  %v1754_v63 = vadd.f32 %v2463_v59, %v2225_v50 }
 0x10f   :  { %v1795_v0 = vadd.f32 %v2485_v61, %v1754_v63 }
 0x127   :  { %v2502_v1 = vpop.f32.mrb[4].mxu0 }
 0x128   :  { %v2524_v2 = vpop.f32.mrb[4].mxu1  ;;  %v2503_v3 = vpop.f32.mrb[5].mxu0 }
 0x129   :  { %v2504_v4 = vadd.f32 %v2503_v3, %v2502_v1  ;;  %v2525_v5 = vpop.f32.mrb[5].mxu1  ;;  %v2505_v6 = vpop.f32.mrb[6].mxu0 }
 0x12a   :  { %v2526_v7 = vadd.f32 %v2525_v5, %v2524_v2  ;;  %v2527_v8 = vpop.f32.mrb[6].mxu1  ;;  %v2506_v9 = vpop.f32.mrb[7].mxu0 }
 0x12b   :  { %v1833_v10 = vadd.f32 %v2504_v4, %v1792_v62  ;;  %v2507_v11 = vadd.f32 %v2506_v9, %v2505_v6  ;;  %v2528_v12 = vpop.f32.mrb[7].mxu1 }
 0x12c   :  { %v2529_v13 = vadd.f32 %v2528_v12, %v2527_v8 }
 0x12d   :  { %v1874_v14 = vadd.f32 %v2526_v7, %v1833_v10  ;;  %v1836_v15 = vadd.f32 %v2507_v11, %v1795_v0 }
 0x12f   :  { %v1877_v16 = vadd.f32 %v2529_v13, %v1836_v15 }
 0x147   :  { %v2546_v17 = vpop.f32.mrb[8].mxu0 }
 0x148   :  { %v2568_v18 = vpop.f32.mrb[8].mxu1  ;;  %v2547_v19 = vpop.f32.mrb[9].mxu0 }
 0x149   :  { %v2569_v20 = vpop.f32.mrb[9].mxu1  ;;  %v2548_v21 = vadd.f32 %v2547_v19, %v2546_v17  ;;  %v2549_v23 = vpop.f32.mrb[10].mxu0 }
 0x14a   :  { %v2570_v22 = vadd.f32 %v2569_v20, %v2568_v18  ;;  %v2571_v24 = vpop.f32.mrb[10].mxu1  ;;  %v2550_v25 = vpop.f32.mrb[11].mxu0 }
 0x14b   :  { %v2572_v26 = vpop.f32.mrb[11].mxu1  ;;  %v1915_v27 = vadd.f32 %v2548_v21, %v1874_v14  ;;  %v2551_v28 = vadd.f32 %v2550_v25, %v2549_v23 }
 0x14c   :  { %v2573_v29 = vadd.f32 %v2572_v26, %v2571_v24 }
 0x14d   :  { %v1956_v30 = vadd.f32 %v2570_v22, %v1915_v27  ;;  %v1918_v31 = vadd.f32 %v2551_v28, %v1877_v16 }
 0x14f   :  { %v1959_v32 = vadd.f32 %v2573_v29, %v1918_v31 }
 0x167   :  { %v2590_v33 = vpop.f32.mrb[12].mxu0 }
 0x168   :  { %v2612_v34 = vpop.f32.mrb[12].mxu1  ;;  %v2591_v35 = vpop.f32.mrb[13].mxu0 }
 0x169   :  { %v2592_v36 = vadd.f32 %v2591_v35, %v2590_v33  ;;  %v2613_v37 = vpop.f32.mrb[13].mxu1  ;;  %v2593_v38 = vpop.f32.mrb[14].mxu0 }
 0x16a   :  { %v2614_v39 = vadd.f32 %v2613_v37, %v2612_v34  ;;  %v2615_v40 = vpop.f32.mrb[14].mxu1  ;;  %v2594_v41 = vpop.f32.mrb[15].mxu0 }
 0x16b   :  { %v1997_v42 = vadd.f32 %v2592_v36, %v1956_v30  ;;  %v2595_v43 = vadd.f32 %v2594_v41, %v2593_v38  ;;  %v2616_v44 = vpop.f32.mrb[15].mxu1 }
 0x16c   :  { %v2617_v45 = vadd.f32 %v2616_v44, %v2615_v40 }
 0x16d   :  { %v2038_v46 = vadd.f32 %v2614_v39, %v1997_v42  ;;  %v2000_v47 = vadd.f32 %v2595_v43, %v1959_v32 }
 0x16f   :  { %v2041_v48 = vadd.f32 %v2617_v45, %v2000_v47 }
 0x187   :  { %v2634_v49 = vpop.f32.mrb[16].mxu0 }
 0x188   :  { %v2656_v50 = vpop.f32.mrb[16].mxu1  ;;  %v2635_v51 = vpop.f32.mrb[17].mxu0 }
 0x189   :  { %v2636_v52 = vadd.f32 %v2635_v51, %v2634_v49  ;;  %v2657_v53 = vpop.f32.mrb[17].mxu1  ;;  %v2637_v54 = vpop.f32.mrb[18].mxu0 }
 0x18a   :  { %v2658_v55 = vadd.f32 %v2657_v53, %v2656_v50  ;;  %v2659_v56 = vpop.f32.mrb[18].mxu1  ;;  %v2638_v57 = vpop.f32.mrb[19].mxu0 }
 0x18b   :  { %v2079_v58 = vadd.f32 %v2636_v52, %v2038_v46  ;;  %v2639_v59 = vadd.f32 %v2638_v57, %v2637_v54  ;;  %v2660_v60 = vpop.f32.mrb[19].mxu1 }
 0x18c   :  { %v2661_v61 = vadd.f32 %v2660_v60, %v2659_v56 }
 0x18d   :  { %v2120_v62 = vadd.f32 %v2658_v55, %v2079_v58  ;;  %v2082_v63 = vadd.f32 %v2639_v59, %v2041_v48 }
 0x18f   :  { %v2123_v0 = vadd.f32 %v2661_v61, %v2082_v63 }
 0x1a7   :  { %v2678_v1 = vpop.f32.mrb[20].mxu0 }
 0x1a8   :  { %v2700_v2 = vpop.f32.mrb[20].mxu1  ;;  %v2679_v3 = vpop.f32.mrb[21].mxu0 }
 0x1a9   :  { %v2701_v4 = vpop.f32.mrb[21].mxu1  ;;  %v2680_v5 = vadd.f32 %v2679_v3, %v2678_v1  ;;  %v2681_v7 = vpop.f32.mrb[22].mxu0 }
 0x1aa   :  { %v2702_v6 = vadd.f32 %v2701_v4, %v2700_v2  ;;  %v2703_v8 = vpop.f32.mrb[22].mxu1  ;;  %v2682_v9 = vpop.f32.mrb[23].mxu0 }
 0x1ab   :  { %v2704_v10 = vpop.f32.mrb[23].mxu1  ;;  %v2161_v11 = vadd.f32 %v2680_v5, %v2120_v62  ;;  %v2683_v12 = vadd.f32 %v2682_v9, %v2681_v7 }
 0x1ac   :  { %v2705_v13 = vadd.f32 %v2704_v10, %v2703_v8 }
 0x1ad   :  { %v2202_v14 = vadd.f32 %v2702_v6, %v2161_v11  ;;  %v2164_v15 = vadd.f32 %v2683_v12, %v2123_v0 }
 0x1af   :  { %v2210_v16 = vmul.f32 0.70710677, %v2202_v14  ;;  %v2205_v17 = vadd.f32 %v2705_v13, %v2164_v15  ;;  %v2208_v20 = vmul.f32 0.5, %v2202_v14 }
 0x1b1   :  { %2901 = verf.f32 %v2210_v16  ;;  %v2211_v18 = vmul.f32 0.70710677, %v2205_v17  ;;  %v2209_v24 = vmul.f32 0.5, %v2205_v17 }
 0x1b3   :  { %2903 = verf.f32 %v2211_v18 }
 0x1bb   :  { %v2902_v19 = vpop.eup %2901 }
 0x1bc   :  { %v2214_v21 = vadd.f32 1.0, %v2902_v19 }
 0x1bd   :  { %v2904_v22 = vpop.eup %2903 }
 0x1be   :  { %v2216_v23 = vmul.f32 %v2214_v21, %v2208_v20  ;;  %v2215_v25 = vadd.f32 1.0, %v2904_v22 }
 0x1c0   :  { %2218 = vst [vmem:[%s3048_s3] sm:$0xff] %v2216_v23  ;;  %v2217_v26 = vmul.f32 %v2215_v25, %v2209_v24 }
 0x1c2   :  { %2219 = vst [vmem:[%s3048_s3 + $0x8] sm:$0xff] %v2217_v26 }
 0x1c3   :  { %2224 = vsyncpa [#allocation3], 1 }

</bundles_post_ra>
